<compile_context>
chip_gen: v6e
topology: v6e:2x2x1
jax: 0.10.0
libtpu: 0.0.40
codegen_flags: <defaults>
</compile_context>

<pallas_src>
import functools

import numpy as np
import jax
import jax.numpy as jnp
from jax.experimental import pallas as pl
from jax.experimental.pallas import tpu as pltpu


def _round_up(x, m):
    return (x + m - 1) // m * m


# ----------------------------------------------------------------------------
# Bilinear (align_corners=False) interpolation matrix, matching
# torch.nn.Upsample(scale_factor=4, mode='bilinear', align_corners=False).
# Rows sum to exactly 1 (all weights are dyadic: k/8).
# ----------------------------------------------------------------------------
def bilinear_matrix(out_size, in_size, dtype=np.float32):
    U = np.zeros((out_size, in_size), dtype=dtype)
    scale = in_size / out_size
    for o in range(out_size):
        src = (o + 0.5) * scale - 0.5
        src = max(src, 0.0)                      # PyTorch clamps negative coords
        i0 = min(int(np.floor(src)), in_size - 1)
        i1 = min(i0 + 1, in_size - 1)
        frac = src - i0
        U[o, i0] += 1.0 - frac
        U[o, i1] += frac
    return U


# ----------------------------------------------------------------------------
# Kernel 1 (low-res): fused 1x1 conv  p = x @ W1 + b1
#   x: (tm, E) bf16, W1: (E, 256) bf16, b1: (1, 256) f32 -> p: (tm, 256) bf16
# ----------------------------------------------------------------------------
def _lowres_conv_kernel(x_ref, w_ref, b_ref, o_ref):
    acc = jnp.dot(x_ref[...], w_ref[...], preferred_element_type=jnp.float32)
    acc = acc + b_ref[...]                        # f32 epilogue
    o_ref[...] = acc.astype(o_ref.dtype)


def lowres_conv(x2d, w, b, out_dtype=jnp.bfloat16, tm_target=512):
    M, E = x2d.shape
    C = w.shape[1]
    tm = min(tm_target, _round_up(M, 8))          # large tiles; no full-array fallback
    Mp = _round_up(M, tm)
    if Mp != M:
        x2d = jnp.pad(x2d, ((0, Mp - M), (0, 0)))  # padded rows sliced off below
    out = pl.pallas_call(
        _lowres_conv_kernel,
        out_shape=jax.ShapeDtypeStruct((Mp, C), out_dtype),
        grid=(Mp // tm,),
        in_specs=[
            pl.BlockSpec((tm, E), lambda i: (i, 0)),
            pl.BlockSpec((E, C), lambda i: (0, 0)),
            pl.BlockSpec((1, C), lambda i: (0, 0)),
        ],
        out_specs=pl.BlockSpec((tm, C), lambda i: (i, 0)),
        compiler_params=pltpu.CompilerParams(dimension_semantics=("parallel",)),
    )(x2d, w, b)
    return out[:M] if Mp != M else out


# ----------------------------------------------------------------------------
# Kernel 2 (mid-res): bilinear x4 along H as a single 2D matmul per batch
#   t[b] = Uh @ p[b]        Uh: (4H, H), p[b]: (H, W*C)
# ----------------------------------------------------------------------------
def _rows_upsample_kernel(uh_ref, p_ref, o_ref):
    o_ref[0] = jnp.dot(uh_ref[...], p_ref[0],
                       preferred_element_type=jnp.float32).astype(o_ref.dtype)


def upsample_rows(uh, p3):
    B, H, WC = p3.shape
    H4 = uh.shape[0]
    return pl.pallas_call(
        _rows_upsample_kernel,
        out_shape=jax.ShapeDtypeStruct((B, H4, WC), p3.dtype),
        grid=(B,),
        in_specs=[
            pl.BlockSpec((H4, H), lambda b: (0, 0)),
            pl.BlockSpec((1, H, WC), lambda b: (b, 0, 0)),
        ],
        out_specs=pl.BlockSpec((1, H4, WC), lambda b: (b, 0, 0)),
        compiler_params=pltpu.CompilerParams(dimension_semantics=("parallel",)),
    )(uh, p3)


# ----------------------------------------------------------------------------
# Kernel 3 (high-res, fused): bilinear x4 along W + ReLU + conv_seg
#   per row-tile of (B*4H):
#     s[r, J, c] = sum_w Uw[J, w] * t[r, w, c]        (batched matmul, MXU)
#     o          = relu(s).reshape(-1, C) @ Wseg_pad + bseg_pad
#   Output last dim padded to 128 classes -> lane-dense, unmasked stores.
# ----------------------------------------------------------------------------
def _cols_upsample_seg_kernel(t_ref, uw_ref, ws_ref, bs_ref, o_ref):
    trh, W, C = t_ref.shape
    W4 = uw_ref.shape[0]
    uwb = jnp.broadcast_to(uw_ref[...][None, :, :], (trh, W4, W))
    s = jax.lax.dot_general(                       # flash-attn style batched matmul
        uwb, t_ref[...],
        dimension_numbers=(((2,), (1,)), ((0,), (0,))),
        preferred_element_type=jnp.float32)        # (trh, W4, C) f32
    z = jnp.maximum(s, 0.0).astype(ws_ref.dtype)   # ReLU (f32), cast for MXU
    z2 = z.reshape(trh * W4, C)
    o = jnp.dot(z2, ws_ref[...], preferred_element_type=jnp.float32) + bs_ref[...]
    o_ref[...] = o.astype(o_ref.dtype)


def upsample_cols_relu_seg(t3, uw, ws, bs, out_dtype=jnp.float32, trh_target=32):
    R, W, C = t3.shape
    W4 = uw.shape[0]
    Kp = ws.shape[1]
    trh = min(trh_target, _round_up(R, 8))
    Rp = _round_up(R, trh)
    if Rp != R:
        t3 = jnp.pad(t3, ((0, Rp - R), (0, 0), (0, 0)))
    out = pl.pallas_call(
        _cols_upsample_seg_kernel,
        out_shape=jax.ShapeDtypeStruct((Rp * W4, Kp), out_dtype),
        grid=(Rp // trh,),
        in_specs=[
            pl.BlockSpec((trh, W, C), lambda i: (i, 0, 0)),
            pl.BlockSpec((W4, W), lambda i: (0, 0)),
            pl.BlockSpec((C, Kp), lambda i: (0, 0)),
            pl.BlockSpec((1, Kp), lambda i: (0, 0)),
        ],
        out_specs=pl.BlockSpec((trh * W4, Kp), lambda i: (i, 0)),
        compiler_params=pltpu.CompilerParams(dimension_semantics=("parallel",)),
    )(t3, uw, ws, bs)
    return out[: R * W4] if Rp != R else out


# ----------------------------------------------------------------------------
# Full forward pass of VITDaFormerAttnHead (eval mode)
# ----------------------------------------------------------------------------
def vit_daformer_attn_head(x_nchw, params, num_classes, *, eps=1e-5,
                           compute_dtype=jnp.bfloat16):
    B, E, H, W = x_nchw.shape
    C = 256
    H4, W4 = 4 * H, 4 * W
    Kp = _round_up(max(num_classes, 1), 128)      # lane-dense padded class dim

    # --- host-side folding (f32): upscale conv  o  fuse conv  o  BN affine -------
    bn_scale = params["bn_gamma"] / jnp.sqrt(params["bn_var"] + eps)
    bn_shift = params["bn_beta"] - params["bn_mean"] * bn_scale
    w1 = (params["w_up"] @ params["w_fuse"]) * bn_scale[None, :]          # (E, C)
    b1 = bn_scale * (params["b_up"] @ params["w_fuse"]) + bn_shift        # (C,)

    w_seg_p = jnp.zeros((C, Kp), jnp.float32).at[:, :num_classes].set(params["w_seg"])
    b_seg_p = jnp.zeros((1, Kp), jnp.float32).at[:, :num_classes].set(params["b_seg"])

    uh = jnp.asarray(bilinear_matrix(H4, H), compute_dtype)   # exact in bf16
    uw = jnp.asarray(bilinear_matrix(W4, W), compute_dtype)

    # --- stage 1: low-res fused conv  p = x @ W1 + b1 ---------------------------
    x_nhwc = jnp.transpose(x_nchw, (0, 2, 3, 1)).astype(compute_dtype)    # (B,H,W,E)
    p = lowres_conv(x_nhwc.reshape(B * H * W, E),
                    w1.astype(compute_dtype), b1.reshape(1, C),
                    out_dtype=compute_dtype)                              # (B*H*W, C)

    # --- stage 2: bilinear x4 along H (2D matmul per batch) ---------------------
    t = upsample_rows(uh, p.reshape(B, H, W * C))                         # (B,4H,W*C)

    # --- stage 3: bilinear x4 along W + ReLU + conv_seg (fused, high-res) -------
    # Dropout2d(0.1) is identity in eval mode.
    # TODO(synk): training-mode channel dropout (Dropout2d) not implemented.
    o = upsample_cols_relu_seg(t.reshape(B * H4, W, C), uw,
                               w_seg_p.astype(compute_dtype), b_seg_p,
                               out_dtype=jnp.float32)                     # (B*4H*4W, Kp)

    o = o.reshape(B, H4, W4, Kp)[..., :num_classes]
    return jnp.transpose(o, (0, 3, 1, 2))         # NHWC -> NCHW (small 19-ch tensor)


# ----------------------------------------------------------------------------
# Demo
# ----------------------------------------------------------------------------
if __name__ == "__main__":
    B, E, H, W = 2, 32, 8, 8          # batch=2, embed_dim=32, 8x8 tokens
    num_classes = 19
    C = 256

    key = jax.random.PRNGKey(0)
    ks = jax.random.split(key, 10)

    x_nchw = jax.random.normal(ks[0], (B, E, H, W), jnp.float32)

    params = {
        # upscale conv: (Cin=E, Cout=256) channels-last (transpose of torch (Cout,Cin,1,1))
        "w_up": 0.05 * jax.random.normal(ks[1], (E, C), jnp.float32),
        "b_up": 0.05 * jax.random.normal(ks[2], (C,), jnp.float32),
        # fuse conv (no bias; BN follows)
        "w_fuse": 0.05 * jax.random.normal(ks[3], (C, C), jnp.float32),
        "bn_gamma": 1.0 + 0.1 * jax.random.normal(ks[4], (C,), jnp.float32),
        "bn_beta": 0.1 * jax.random.normal(ks[5], (C,), jnp.float32),
        "bn_mean": 0.1 * jax.random.normal(ks[6], (C,), jnp.float32),
        "bn_var": 1.0 + jnp.abs(jax.random.normal(ks[7], (C,), jnp.float32)),
        # segmentation head
        "w_seg": 0.05 * jax.random.normal(ks[8], (C, num_classes), jnp.float32),
        "b_seg": 0.05 * jax.random.normal(ks[9], (num_classes,), jnp.float32),
    }

    out = vit_daformer_attn_head(x_nchw, params, num_classes)
    jax.block_until_ready(out)
    assert out.shape == (B, num_classes, 4 * H, 4 * W), out.shape
    assert out.dtype == jnp.float32
    print("KERNEL_OK")
</pallas_src>

<mosaic_0001>
module attributes {stable_mosaic.version = 11 : i64} {
  func.func @_lowres_conv_kernel(%arg0: i32, %arg1: memref<128x32xbf16, #tpu.memory_space<vmem>>, %arg2: memref<32x256xbf16, #tpu.memory_space<vmem>>, %arg3: memref<1x256xf32, #tpu.memory_space<vmem>>, %arg4: memref<128x256xbf16, #tpu.memory_space<vmem>>) attributes {dimension_semantics = [#tpu.dimension_semantics<parallel>], iteration_bounds = array<i64: 1>, scalar_prefetch = 0 : i64, scratch_operands = 0 : i64, tpu.core_type = #tpu.core_type<tc>, window_params = [{transform_indices = @transform_0, window_bounds = array<i64: 128, 32>}, {pipeline_mode = #tpu.pipeline_mode<synchronous>, transform_indices = @transform_1, window_bounds = array<i64: 32, 256>}, {pipeline_mode = #tpu.pipeline_mode<synchronous>, transform_indices = @transform_2, window_bounds = array<i64: 1, 256>}, {transform_indices = @transform_3, window_bounds = array<i64: 128, 256>}]} {
    %c0 = arith.constant 0 : index
    %c0_0 = arith.constant 0 : index
    %0 = vector.load %arg1[%c0, %c0_0] : memref<128x32xbf16, #tpu.memory_space<vmem>>, vector<128x32xbf16>
    %c0_1 = arith.constant 0 : index
    %c0_2 = arith.constant 0 : index
    %1 = vector.load %arg2[%c0_1, %c0_2] : memref<32x256xbf16, #tpu.memory_space<vmem>>, vector<32x256xbf16>
    %cst = arith.constant dense<0.000000e+00> : vector<128x256xf32>
    %2 = tpu.matmul %0, %1, %cst {dimension_numbers = #tpu.dot_dimension_numbers<[1], [0], [0], [1], [0, 0, 1, 1], [], []>} : vector<128x32xbf16>, vector<32x256xbf16>, vector<128x256xf32> -> vector<128x256xf32>
    %c0_3 = arith.constant 0 : index
    %c0_4 = arith.constant 0 : index
    %3 = vector.load %arg3[%c0_3, %c0_4] : memref<1x256xf32, #tpu.memory_space<vmem>>, vector<1x256xf32>
    %4 = vector.broadcast %3 : vector<1x256xf32> to vector<128x256xf32>
    %5 = arith.addf %2, %4 : vector<128x256xf32>
    %6 = arith.truncf %5 : vector<128x256xf32> to vector<128x256xbf16>
    %c0_5 = arith.constant 0 : index
    %c0_6 = arith.constant 0 : index
    %7 = vector.load %arg4[%c0_5, %c0_6] : memref<128x256xbf16, #tpu.memory_space<vmem>>, vector<128x256xbf16>
    tpu.vector_store %arg4[%c0_5, %c0_6], %6 {strides = array<i32>} : memref<128x256xbf16, #tpu.memory_space<vmem>>, vector<128x256xbf16>,
    return
  }
  func.func @transform_0(%arg0: i32) -> (i32, i32) {
    %c0_i32 = arith.constant 0 : i32
    %c0_i32_0 = arith.constant 0 : i32
    return %arg0, %c0_i32 : i32, i32
  }
  func.func @transform_1(%arg0: i32) -> (i32, i32) {
    %c0_i32 = arith.constant 0 : i32
    %c0_i32_0 = arith.constant 0 : i32
    %c0_i32_1 = arith.constant 0 : i32
    return %c0_i32, %c0_i32_0 : i32, i32
  }
  func.func @transform_2(%arg0: i32) -> (i32, i32) {
    %c0_i32 = arith.constant 0 : i32
    %c0_i32_0 = arith.constant 0 : i32
    %c0_i32_1 = arith.constant 0 : i32
    return %c0_i32, %c0_i32_0 : i32, i32
  }
  func.func @transform_3(%arg0: i32) -> (i32, i32) {
    %c0_i32 = arith.constant 0 : i32
    %c0_i32_0 = arith.constant 0 : i32
    return %arg0, %c0_i32 : i32, i32
  }
}

</mosaic_0001>

<bundles_post_ra>
// kernel: tpu_custom_call.1
= control target key start
LH: loop header
LB: loop body
LE: loop exit
PB: predicated region body
PF: predicated region fallthrough
CT: control target
= control target key end

     0   :  { %v470_v2 = vmov 0   ;;  %vm108_vm0 = vcmask 261120   ;;  %s580_s0 = inlined_call_operand.vmem [shape: bf16[128,32], index: 0, kind: input, shape index: {}]   ;;  %s581_s1 = inlined_call_operand.vmem [shape: bf16[32,256], index: 1, kind: input, shape index: {}]   ;;  %s582_s2 = inlined_call_operand.vmem [shape: f32[1,256], index: 2, kind: input, shape index: {}]   ;;  %s583_s3 = inlined_call_operand.hbm [shape: bf16[128,256], index: 3, kind: output, shape index: {}]  }
   0x1   :  { %v434_v0 = vld [vmem:[%s581_s1 + $0x14] ss:$8 sps:$4 sm:$0xff]   ;;  %v436_v1 = vld [vmem:[%s581_s1 + $0x10] ss:$8 sps:$4 sm:$0xff]   ;;  %165 = vmatprep.mubr.bf16.mxu0 %v470_v2  ;;  %205 = vmatprep.mubr.bf16.mxu1 %v470_v2  ;;  %v437_v3 = vld [vmem:[%s581_s1 + $0x4] ss:$8 sps:$4 sm:$0xff]  }
   0x2   :  { %145 = vmatprep.subr.bf16.mxu0 %v434_v0  ;;  %426 = vmatprep.subr.bf16.mxu1 %v434_v0  ;;  %v439_v4 = vld [vmem:[%s581_s1] ss:$8 sps:$4 sm:$0xff]  }
   0x3   :  { %146 = vmatpush1.bf16.msra.mxu0 %v436_v1  ;;  %428 = vmatpush1.bf16.msra.mxu1 %v436_v1  ;;  %v440_v5 = vld [vmem:[%s580_s0] sm:$0xff]  }
   0x4   :  { %147 = vmatprep.subr.bf16.mxu0 %v437_v3  ;;  %427 = vmatprep.subr.bf16.mxu1 %v437_v3  ;;  %v441_v6 = vld [vmem:[%s580_s0 + $0x20] sm:$0xff]  }
   0x7   :  { %148 = vmatpush1.bf16.msra.mxu0 %v439_v4  ;;  %429 = vmatpush1.bf16.msra.mxu1 %v439_v4 }
   0xa   :  { %386 = vmatmul.mubr.msk.bf16.vlgmr.msra.gmra.mxu0 %vm108_vm0, %v440_v5  ;;  %390 = vmatmul.mubr.msk.bf16.vlgmr.msra.gmra.mxu1 %vm108_vm0, %v441_v6 }
   0xb   :  { %175 = vmatprep.mubr.bf16.mxu0 %v470_v2  ;;  %215 = vmatprep.mubr.bf16.mxu1 %v470_v2 }
   0xc   :  { %8 = vsyncpa [#allocation3], 0  ;;  %v442_v7 = vld [vmem:[%s580_s0 + $0x8] sm:$0xff]   ;;  %v444_v9 = vld [vmem:[%s580_s0 + $0x10] sm:$0xff]   ;;  %v38_v13 = vlaneseq }
   0xd   :  { %v443_v8 = vld [vmem:[%s580_s0 + $0x28] sm:$0xff]   ;;  %v445_v10 = vld [vmem:[%s580_s0 + $0x30] sm:$0xff]   ;;  %v446_v11 = vld [vmem:[%s580_s0 + $0x18] sm:$0xff]  }
   0xe   :  { %v447_v12 = vld [vmem:[%s580_s0 + $0x38] sm:$0xff]   ;;  %v39_v14 = vshrl.u32 %v38_v13, 7  ;;  %v36_v17 = vld [vmem:[%s582_s2] sm:$0x3]  ;;  %s471_s0 = smov [#allocation2]  }
   0xf   :  { %s363_s2 = sshll.u32 %s471_s0, 4  ;;  %s364_s2 = int_to_ptr.vmem [resolvable:$true] %s363_s2 }
  0x10   :  { %v40_v15 = vsub.s32 0, %v39_v14  ;;  %v44_v16 = vsub.s32 1, %v39_v14  ;;  %s448_s10 = scalar_lea.vmem %s364_s2, 2048  ;;  %p453_p1 = scmp.lt.s32.totalorder %s364_s2, %s364_s2 }
  0x11   :  { %p449_p0 = scmp.ne.s32.totalorder %s364_s2, %s448_s10  ;;  %p454_p2 = scmp.lt.s32.totalorder %s448_s10, %s448_s10 }
  0x12   :  { %387 = vmatmul.mubr.msk.bf16.gmra.mxu0 %vm108_vm0, %v442_v7  ;;  %391 = vmatmul.mubr.msk.bf16.gmra.mxu1 %vm108_vm0, %v443_v8  ;;  %v541_v18 = vrot.slane %v36_v17, %v40_v15  ;;  %v543_v19 = vrot.slane %v36_v17, %v44_v16 }
  0x13   :  { %185 = vmatprep.mubr.bf16.mxu0 %v470_v2  ;;  %225 = vmatprep.mubr.bf16.mxu1 %v470_v2  ;;  %p455_p3 = por %p454_p2, %p453_p1 }
  0x15   :  { %p456_p4 = pnand %p455_p3, %p449_p0 }
  0x1a   :  { %388 = vmatmul.mubr.msk.bf16.gmra.mxu0 %vm108_vm0, %v444_v9  ;;  %392 = vmatmul.mubr.msk.bf16.gmra.mxu1 %vm108_vm0, %v445_v10 }
  0x1b   :  { %195 = vmatprep.mubr.bf16.mxu0 %v470_v2  ;;  %235 = vmatprep.mubr.bf16.mxu1 %v470_v2 }
  0x22   :  { %389 = vmatmul.mubr.msk.bf16.gmra.mxu0 %vm108_vm0, %v446_v11  ;;  %393 = vmatmul.mubr.msk.bf16.gmra.mxu1 %vm108_vm0, %v447_v12 }
  0xca   :  { %v167_v20 = vpop.f32.mrf.mxu0  ;;  %v207_v21 = vpop.f32.mrf.mxu1 }
  0xcb   :  { %v168_v24 = vadd.f32 %v167_v20, %v541_v18  ;;  %v208_v25 = vadd.f32 %v207_v21, %v541_v18 }
  0xcc   :  { %v169_v22 = vpop.f32.mrf.mxu0  ;;  %v209_v23 = vpop.f32.mrf.mxu1 }
  0xcd   :  { %v170_v26 = vadd.f32 %v169_v22, %v543_v19  ;;  %v210_v27 = vadd.f32 %v209_v23, %v543_v19 }
  0xce   :  { %v171_v28 = vpop.f32.mrf.mxu0  ;;  %v211_v29 = vpop.f32.mrf.mxu1 }
  0xcf   :  { %v410_v30 = vpack.c.bf16 %v170_v26, %v168_v24  ;;  %v418_v31 = vpack.c.bf16 %v210_v27, %v208_v25  ;;  %v172_v34 = vadd.f32 %v171_v28, %v541_v18  ;;  %v212_v35 = vadd.f32 %v211_v29, %v541_v18 }
  0xd0   :  { %v173_v32 = vpop.f32.mrf.mxu0  ;;  %v213_v33 = vpop.f32.mrf.mxu1 }
  0xd1   :  { %342 = vst [vmem:[#allocation2] sm:$0xff] %v410_v30  ;;  %350 = vst [vmem:[#allocation2 + $0x40] sm:$0xff] %v418_v31  ;;  %v174_v36 = vadd.f32 %v173_v32, %v543_v19  ;;  %v214_v37 = vadd.f32 %v213_v33, %v543_v19 }
  0xd2   :  { %v177_v38 = vpop.f32.mrf.mxu0  ;;  %v217_v39 = vpop.f32.mrf.mxu1 }
  0xd3   :  { %v411_v40 = vpack.c.bf16 %v174_v36, %v172_v34  ;;  %v419_v41 = vpack.c.bf16 %v214_v37, %v212_v35  ;;  %v178_v44 = vadd.f32 %v177_v38, %v541_v18  ;;  %v218_v45 = vadd.f32 %v217_v39, %v541_v18 }
  0xd4   :  { %v179_v42 = vpop.f32.mrf.mxu0  ;;  %v219_v43 = vpop.f32.mrf.mxu1 }
  0xd5   :  { %343 = vst [vmem:[#allocation2 + $0x8] sm:$0xff] %v411_v40  ;;  %351 = vst [vmem:[#allocation2 + $0x48] sm:$0xff] %v419_v41  ;;  %v180_v46 = vadd.f32 %v179_v42, %v543_v19  ;;  %v220_v47 = vadd.f32 %v219_v43, %v543_v19 }
  0xd6   :  { %v181_v48 = vpop.f32.mrf.mxu0  ;;  %v221_v49 = vpop.f32.mrf.mxu1 }
  0xd7   :  { %v412_v50 = vpack.c.bf16 %v180_v46, %v178_v44  ;;  %v420_v51 = vpack.c.bf16 %v220_v47, %v218_v45  ;;  %v182_v54 = vadd.f32 %v181_v48, %v541_v18  ;;  %v222_v55 = vadd.f32 %v221_v49, %v541_v18 }
  0xd8   :  { %v183_v52 = vpop.f32.mrf.mxu0  ;;  %v223_v53 = vpop.f32.mrf.mxu1 }
  0xd9   :  { %344 = vst [vmem:[#allocation2 + $0x10] sm:$0xff] %v412_v50  ;;  %352 = vst [vmem:[#allocation2 + $0x50] sm:$0xff] %v420_v51  ;;  %v184_v56 = vadd.f32 %v183_v52, %v543_v19  ;;  %v224_v57 = vadd.f32 %v223_v53, %v543_v19 }
  0xda   :  { %v187_v58 = vpop.f32.mrf.mxu0  ;;  %v227_v59 = vpop.f32.mrf.mxu1 }
  0xdb   :  { %v413_v60 = vpack.c.bf16 %v184_v56, %v182_v54  ;;  %v421_v61 = vpack.c.bf16 %v224_v57, %v222_v55  ;;  %v188_v0 = vadd.f32 %v187_v58, %v541_v18  ;;  %v228_v1 = vadd.f32 %v227_v59, %v541_v18 }
  0xdc   :  { %v189_v62 = vpop.f32.mrf.mxu0  ;;  %v229_v63 = vpop.f32.mrf.mxu1 }
  0xdd   :  { %345 = vst [vmem:[#allocation2 + $0x18] sm:$0xff] %v413_v60  ;;  %353 = vst [vmem:[#allocation2 + $0x58] sm:$0xff] %v421_v61  ;;  %v190_v2 = vadd.f32 %v189_v62, %v543_v19  ;;  %v230_v3 = vadd.f32 %v229_v63, %v543_v19 }
  0xde   :  { %v191_v4 = vpop.f32.mrf.mxu0  ;;  %v231_v5 = vpop.f32.mrf.mxu1 }
  0xdf   :  { %v414_v6 = vpack.c.bf16 %v190_v2, %v188_v0  ;;  %v422_v7 = vpack.c.bf16 %v230_v3, %v228_v1  ;;  %v192_v10 = vadd.f32 %v191_v4, %v541_v18  ;;  %v232_v11 = vadd.f32 %v231_v5, %v541_v18 }
  0xe0   :  { %v193_v8 = vpop.f32.mrf.mxu0  ;;  %v233_v9 = vpop.f32.mrf.mxu1 }
  0xe1   :  { %346 = vst [vmem:[#allocation2 + $0x20] sm:$0xff] %v414_v6  ;;  %354 = vst [vmem:[#allocation2 + $0x60] sm:$0xff] %v422_v7  ;;  %v194_v12 = vadd.f32 %v193_v8, %v543_v19  ;;  %v234_v13 = vadd.f32 %v233_v9, %v543_v19 }
  0xe2   :  { %v197_v14 = vpop.f32.mrf.mxu0  ;;  %v237_v15 = vpop.f32.mrf.mxu1 }
  0xe3   :  { %v415_v16 = vpack.c.bf16 %v194_v12, %v192_v10  ;;  %v423_v17 = vpack.c.bf16 %v234_v13, %v232_v11  ;;  %v198_v22 = vadd.f32 %v197_v14, %v541_v18  ;;  %v238_v23 = vadd.f32 %v237_v15, %v541_v18 }
  0xe4   :  { %v199_v20 = vpop.f32.mrf.mxu0  ;;  %v239_v21 = vpop.f32.mrf.mxu1 }
  0xe5   :  { %347 = vst [vmem:[#allocation2 + $0x28] sm:$0xff] %v415_v16  ;;  %355 = vst [vmem:[#allocation2 + $0x68] sm:$0xff] %v423_v17  ;;  %v200_v24 = vadd.f32 %v199_v20, %v543_v19  ;;  %v240_v25 = vadd.f32 %v239_v21, %v543_v19 }
  0xe6   :  { %v201_v26 = vpop.f32.mrf.mxu0  ;;  %v241_v27 = vpop.f32.mrf.mxu1 }
  0xe7   :  { %v416_v28 = vpack.c.bf16 %v200_v24, %v198_v22  ;;  %v424_v29 = vpack.c.bf16 %v240_v25, %v238_v23  ;;  %v202_v32 = vadd.f32 %v201_v26, %v541_v18  ;;  %v242_v33 = vadd.f32 %v241_v27, %v541_v18 }
  0xe8   :  { %v203_v30 = vpop.f32.mrf.mxu0  ;;  %v243_v31 = vpop.f32.mrf.mxu1 }
  0xe9   :  { %348 = vst [vmem:[#allocation2 + $0x30] sm:$0xff] %v416_v28  ;;  %356 = vst [vmem:[#allocation2 + $0x70] sm:$0xff] %v424_v29  ;;  %v204_v34 = vadd.f32 %v203_v30, %v543_v19  ;;  %v244_v35 = vadd.f32 %v243_v31, %v543_v19 }
  0xeb   :  { %v417_v36 = vpack.c.bf16 %v204_v34, %v202_v32  ;;  %v425_v37 = vpack.c.bf16 %v244_v35, %v242_v33 }
  0xed   :  { %349 = vst [vmem:[#allocation2 + $0x38] sm:$0xff] %v417_v36  ;;  %357 = vst [vmem:[#allocation2 + $0x78] sm:$0xff] %v425_v37 }
  0xee   :  { %459 = shalt.err (!%p456_p4)
}
  0xef   :  { %s472_s11 = smov 128   ;;  %s473_s12 = smov 8  }
  0xf0   :  { %369 = dma.vmem_to_hbm [thread:$0]  %s364_s2, 2048, %s583_s3, [#allocation3], %s472_s11, %s472_s11, %s473_s12  }
  0xf1   :  { %468 = dma.done.wait [#allocation3], 2048  }
  0xf2   :  { %469 = vsyncadd [#allocation3], 4294965248 }
  0xf3   :  { %373 = vsyncpa [#allocation3], 1 }

</bundles_post_ra>
